<compile_context>
chip_gen: v5e
topology: v5e:2x2
jax: 0.10.0
libtpu: 0.0.40
codegen_flags: <defaults>
</compile_context>

<pallas_src>
import functools

import jax
import jax.numpy as jnp
from jax.experimental import pallas as pl
from jax.experimental.pallas import tpu as pltpu


def _contrastive_loss_kernel(o1_ref, o2_ref, lab_ref, out_ref, *,
                             margin, batch, block_rows):
    i = pl.program_id(0)
    n = pl.num_programs(0)

    @pl.when(i == 0)
    def _():
        out_ref[0, 0] = 0.0

    # Native-dtype tiles; cast in-register to f32 for the math.
    o1 = o1_ref[...].astype(jnp.float32)          # (TB, D)
    o2 = o2_ref[...].astype(jnp.float32)          # (TB, D)
    lab = lab_ref[...].astype(jnp.float32)        # (TB, 1)

    diff = o1 - o2
    sq_sum = jnp.sum(diff * diff, axis=1, keepdims=True)     # (TB, 1)
    dist = jnp.sqrt(sq_sum)                                   # EUP sqrt
    hinge = jnp.maximum(margin - dist, 0.0)

    # Torch semantics: (1-label)*0.5*d^2 + label*0.5*clamp(margin-d, 0)^2.
    # d^2 == sq_sum, so use it directly (no redundant dist*dist).
    per_example = (1.0 - lab) * 0.5 * sq_sum + lab * 0.5 * (hinge * hinge)

    # Mask rows of a ragged last tile (only needed when TB doesn't divide B).
    if (n := None) or True:  # keep static structure readable
        pass
    if block_rows * pl.num_programs(0) != batch or True:
        row = jax.lax.broadcasted_iota(jnp.int32, per_example.shape, 0)
        row = row + i * block_rows
        per_example = jnp.where(row < batch, per_example, 0.0)

    out_ref[0, 0] = out_ref[0, 0] + jnp.sum(per_example)

    @pl.when(i == pl.num_programs(0) - 1)
    def _():
        out_ref[0, 0] = out_ref[0, 0] / batch


def _pick_block_rows(batch, feat, itemsize):
    """Pick a batch tile: ~2 MiB per input tile, multiple of 8, conservative
    enough for v5e's 16 MiB scoped-VMEM default with 2 inputs x 2 buffers."""
    target_bytes = 2 * 1024 * 1024
    tb = max(8, (target_bytes // max(1, feat * itemsize)) // 8 * 8)
    if tb >= batch:
        return batch          # single full-batch tile (block == full dim)
    return int(tb)


def contrastive_loss(output1, output2, label, margin=1.0, block_rows=None):
    """Pallas TPU implementation of ContrastiveLoss.forward.

    output1, output2: (B, D) arrays (any float dtype)
    label:            (B,) or (B, 1) array of 0/1 values
    returns scalar float32 loss.
    """
    B, D = output1.shape
    lab = label.reshape(B, 1)

    if block_rows is None:
        block_rows = _pick_block_rows(B, D, jnp.dtype(output1.dtype).itemsize)
    tb = int(block_rows)
    nb = pl.cdiv(B, tb)

    kernel = functools.partial(
        _contrastive_loss_kernel,
        margin=float(margin), batch=B, block_rows=tb)

    out = pl.pallas_call(
        kernel,
        out_shape=jax.ShapeDtypeStruct((1, 1), jnp.float32),
        grid=(nb,),
        in_specs=[
            pl.BlockSpec((tb, D), lambda i: (i, 0)),
            pl.BlockSpec((tb, D), lambda i: (i, 0)),
            pl.BlockSpec((tb, 1), lambda i: (i, 0)),
        ],
        # Scalar accumulator/output lives in SMEM: avoids a lane-sparse
        # (1,1) VMEM tile + masked vst writeback every grid step.
        out_specs=pl.BlockSpec(memory_space=pltpu.SMEM),
        compiler_params=pltpu.CompilerParams(
            dimension_semantics=("arbitrary",),  # batch axis reduces into out
        ),
    )(output1, output2, lab)
    return out[0, 0]


def _reference_loss(output1, output2, label, margin=1.0):
    # Pure-JAX reference mirroring the PyTorch module.
    o1 = output1.astype(jnp.float32)
    o2 = output2.astype(jnp.float32)
    d = jnp.sqrt(jnp.sum((o1 - o2) ** 2, axis=1))
    lab = label.reshape(-1).astype(jnp.float32)
    return jnp.mean(
        (1.0 - lab) * 0.5 * d ** 2
        + lab * 0.5 * jnp.maximum(margin - d, 0.0) ** 2
    )


if __name__ == "__main__":
    key = jax.random.PRNGKey(0)
    k1, k2, k3, k4, k5, k6 = jax.random.split(key, 6)

    # Small shapes consistent with the module: batch=8, hidden=32.
    B, D = 8, 32
    output1 = jax.random.normal(k1, (B, D), dtype=jnp.float32)
    output2 = jax.random.normal(k2, (B, D), dtype=jnp.float32)
    label = jax.random.bernoulli(k3, 0.5, (B,)).astype(jnp.float32)

    loss = contrastive_loss(output1, output2, label, margin=1.0)
    loss = jax.block_until_ready(loss)
    ref = _reference_loss(output1, output2, label, margin=1.0)
    assert jnp.allclose(loss, ref, rtol=1e-5, atol=1e-5), (loss, ref)

    # Second check: multi-tile grid with a ragged last tile (B=20, TB=8)
    # to exercise the accumulator + mask path.
    B2, D2 = 20, 32
    o1b = jax.random.normal(k4, (B2, D2), dtype=jnp.float32)
    o2b = jax.random.normal(k5, (B2, D2), dtype=jnp.float32)
    lb = jax.random.bernoulli(k6, 0.5, (B2,)).astype(jnp.float32)

    loss2 = contrastive_loss(o1b, o2b, lb, margin=1.0, block_rows=8)
    loss2 = jax.block_until_ready(loss2)
    ref2 = _reference_loss(o1b, o2b, lb, margin=1.0)
    assert jnp.allclose(loss2, ref2, rtol=1e-5, atol=1e-5), (loss2, ref2)

    print("KERNEL_OK")
</pallas_src>

<mosaic_0001>
module attributes {stable_mosaic.version = 11 : i64} {
  func.func @_contrastive_loss_kernel(%arg0: i32, %arg1: memref<8x32xf32, #tpu.memory_space<vmem>>, %arg2: memref<8x32xf32, #tpu.memory_space<vmem>>, %arg3: memref<8x1xf32, #tpu.memory_space<vmem>>, %arg4: memref<1x1xf32, #tpu.memory_space<smem>>) attributes {dimension_semantics = [#tpu.dimension_semantics<arbitrary>], iteration_bounds = array<i64: 1>, scalar_prefetch = 0 : i64, scratch_operands = 0 : i64, tpu.core_type = #tpu.core_type<tc>, window_params = [{transform_indices = @transform_0, window_bounds = array<i64: 8, 32>}, {transform_indices = @transform_1, window_bounds = array<i64: 8, 32>}, {transform_indices = @transform_2, window_bounds = array<i64: 8, 1>}, {transform_indices = @transform_3, window_bounds = array<i64: 1, 1>}]} {
    %c0_i32 = arith.constant 0 : i32
    %0 = arith.cmpi eq, %arg0, %c0_i32 : i32
    %1 = arith.extui %0 : i1 to i32
    %c0_i32_0 = arith.constant 0 : i32
    %2 = arith.cmpi ne, %1, %c0_i32_0 : i32
    scf.if %2 {
      %cst_20 = arith.constant 0.000000e+00 : f32
      %c0_21 = arith.constant 0 : index
      %c0_22 = arith.constant 0 : index
      %43 = memref.load %arg4[%c0_21, %c0_22] : memref<1x1xf32, #tpu.memory_space<smem>>
      memref.store %cst_20, %arg4[%c0_21, %c0_22] : memref<1x1xf32, #tpu.memory_space<smem>>
    } else {
    }
    %c0 = arith.constant 0 : index
    %c0_1 = arith.constant 0 : index
    %3 = vector.load %arg1[%c0, %c0_1] : memref<8x32xf32, #tpu.memory_space<vmem>>, vector<8x32xf32>
    %c0_2 = arith.constant 0 : index
    %c0_3 = arith.constant 0 : index
    %4 = vector.load %arg2[%c0_2, %c0_3] : memref<8x32xf32, #tpu.memory_space<vmem>>, vector<8x32xf32>
    %c0_4 = arith.constant 0 : index
    %c0_5 = arith.constant 0 : index
    %5 = vector.load %arg3[%c0_4, %c0_5] : memref<8x1xf32, #tpu.memory_space<vmem>>, vector<8x1xf32>
    %6 = arith.subf %3, %4 : vector<8x32xf32>
    %7 = arith.mulf %6, %6 : vector<8x32xf32>
    %cst = arith.constant dense<0.000000e+00> : vector<8xf32>
    %8 = vector.multi_reduction <add>, %7, %cst [1] : vector<8x32xf32> to vector<8xf32>
    %9 = vector.shape_cast %8 : vector<8xf32> to vector<8x1xf32>
    %10 = math.sqrt %9 : vector<8x1xf32>
    %cst_6 = arith.constant 1.000000e+00 : f32
    %11 = vector.broadcast %cst_6 : f32 to vector<8x1xf32>
    %12 = arith.subf %11, %10 : vector<8x1xf32>
    %cst_7 = arith.constant 0.000000e+00 : f32
    %13 = vector.broadcast %cst_7 : f32 to vector<8x1xf32>
    %14 = arith.maximumf %12, %13 : vector<8x1xf32>
    %cst_8 = arith.constant 1.000000e+00 : f32
    %15 = vector.broadcast %cst_8 : f32 to vector<8x1xf32>
    %16 = arith.subf %15, %5 : vector<8x1xf32>
    %cst_9 = arith.constant 5.000000e-01 : f32
    %17 = vector.broadcast %cst_9 : f32 to vector<8x1xf32>
    %18 = arith.mulf %16, %17 : vector<8x1xf32>
    %19 = arith.mulf %18, %9 : vector<8x1xf32>
    %cst_10 = arith.constant 5.000000e-01 : f32
    %20 = vector.broadcast %cst_10 : f32 to vector<8x1xf32>
    %21 = arith.mulf %5, %20 : vector<8x1xf32>
    %22 = arith.mulf %14, %14 : vector<8x1xf32>
    %23 = arith.mulf %21, %22 : vector<8x1xf32>
    %24 = arith.addf %19, %23 : vector<8x1xf32>
    %25 = tpu.iota {dimensions = array<i32: 0>} : vector<8x1xi32>
    %c8_i32 = arith.constant 8 : i32
    %26 = arith.muli %arg0, %c8_i32 : i32
    %27 = vector.broadcast %26 : i32 to vector<8x1xi32>
    %28 = arith.addi %25, %27 : vector<8x1xi32>
    %c8_i32_11 = arith.constant 8 : i32
    %29 = vector.broadcast %c8_i32_11 : i32 to vector<8x1xi32>
    %30 = arith.cmpi slt, %28, %29 : vector<8x1xi32>
    %cst_12 = arith.constant 0.000000e+00 : f32
    %31 = vector.broadcast %cst_12 : f32 to vector<8x1xf32>
    %32 = arith.select %30, %24, %31 : vector<8x1xi1>, vector<8x1xf32>
    %c0_13 = arith.constant 0 : index
    %c0_14 = arith.constant 0 : index
    %33 = memref.load %arg4[%c0_13, %c0_14] : memref<1x1xf32, #tpu.memory_space<smem>>
    %34 = vector.shape_cast %32 : vector<8x1xf32> to vector<1x8x1xf32>
    %cst_15 = arith.constant dense<0.000000e+00> : vector<1xf32>
    %35 = vector.multi_reduction <add>, %34, %cst_15 [1, 2] : vector<1x8x1xf32> to vector<1xf32>
    %36 = vector.shape_cast %35 : vector<1xf32> to vector<1x1x1xf32>
    %37 = vector.extract %36[0, 0, 0] : f32 from vector<1x1x1xf32>
    %38 = arith.addf %33, %37 : f32
    %c0_16 = arith.constant 0 : index
    %c0_17 = arith.constant 0 : index
    %39 = memref.load %arg4[%c0_16, %c0_17] : memref<1x1xf32, #tpu.memory_space<smem>>
    memref.store %38, %arg4[%c0_16, %c0_17] : memref<1x1xf32, #tpu.memory_space<smem>>
    %c0_i32_18 = arith.constant 0 : i32
    %40 = arith.cmpi eq, %arg0, %c0_i32_18 : i32
    %41 = arith.extui %40 : i1 to i32
    %c0_i32_19 = arith.constant 0 : i32
    %42 = arith.cmpi ne, %41, %c0_i32_19 : i32
    scf.if %42 {
      %c0_20 = arith.constant 0 : index
      %c0_21 = arith.constant 0 : index
      %43 = memref.load %arg4[%c0_20, %c0_21] : memref<1x1xf32, #tpu.memory_space<smem>>
      %cst_22 = arith.constant 8.000000e+00 : f32
      %44 = arith.divf %43, %cst_22 : f32
      %c0_23 = arith.constant 0 : index
      %c0_24 = arith.constant 0 : index
      %45 = memref.load %arg4[%c0_23, %c0_24] : memref<1x1xf32, #tpu.memory_space<smem>>
      memref.store %44, %arg4[%c0_23, %c0_24] : memref<1x1xf32, #tpu.memory_space<smem>>
    } else {
    }
    return
  }
  func.func @transform_0(%arg0: i32) -> (i32, i32) {
    %c0_i32 = arith.constant 0 : i32
    %c0_i32_0 = arith.constant 0 : i32
    return %arg0, %c0_i32 : i32, i32
  }
  func.func @transform_1(%arg0: i32) -> (i32, i32) {
    %c0_i32 = arith.constant 0 : i32
    %c0_i32_0 = arith.constant 0 : i32
    return %arg0, %c0_i32 : i32, i32
  }
  func.func @transform_2(%arg0: i32) -> (i32, i32) {
    %c0_i32 = arith.constant 0 : i32
    %c0_i32_0 = arith.constant 0 : i32
    return %arg0, %c0_i32 : i32, i32
  }
  func.func @transform_3(%arg0: i32) -> (i32, i32) {
    %c0_i32 = arith.constant 0 : i32
    %c0_i32_0 = arith.constant 0 : i32
    %c0_i32_1 = arith.constant 0 : i32
    return %c0_i32, %c0_i32_0 : i32, i32
  }
}

</mosaic_0001>

<bundles_post_ra>
// kernel: tpu_custom_call.1
= control target key start
LH: loop header
LB: loop body
LE: loop exit
PB: predicated region body
PF: predicated region fallthrough
CT: control target
= control target key end

     0   :  { %8 = vsyncpa [#allocation3], 0  ;;  %s204_s0 = inlined_call_operand.vmem [shape: f32[8,32], index: 0, kind: input, shape index: {}]   ;;  %s205_s1 = inlined_call_operand.hbm [shape: f32[8,32], index: 1, kind: input, shape index: {}]   ;;  %s206_s2 = inlined_call_operand.vmem [shape: f32[8,1], index: 2, kind: input, shape index: {}]   ;;  %s207_s3 = inlined_call_operand.hbm [shape: f32[1,1], index: 3, kind: output, shape index: {}]  }
   0x1   :  { %9 = vsyncpa [#allocation4], 0  ;;  %s17_s14 = sshll.u32 %s205_s1, 4  ;;  %s169_s15 = smov [#allocation2]   ;;  %s18_s14 = int_to_ptr.hbm [resolvable:$true] %s17_s14 }
   0x2   :  { %s19_s16 = sshll.u32 %s169_s15, 4  ;;  %s20_s16 = int_to_ptr.vmem [resolvable:$true] %s19_s16 }
   0x3   :  { %22 = dma.hbm_to_vmem [thread:$0]  %s18_s14, 128, %s20_s16, [#allocation3]  }
   0x4   :  { %165 = dma.done.wait [#allocation3], 128  }
   0x5   :  { %166 = vsyncadd [#allocation3], 4294967168  ;;  %v35_v0 = vld [vmem:[%s204_s0] sm:$0xff]  ;;  %vm40_vm0 = vcmask 261120   ;;  %vm73_vm3 = vcmask 7168   ;;  %v170_v27 = vmov 8.0  }
   0x6   :  { %v36_v1 = vld [vmem:[#allocation2] sm:$0xff]  ;;  %s106_s21 = sshll.u32 %s207_s3, 4  ;;  %s171_s24 = smov [#allocation5]   ;;  %s107_s21 = int_to_ptr.hbm [resolvable:$true] %s106_s21 }
   0x7   :  { %v38_v2 = vsub.f32 %v35_v0, %v36_v1  ;;  %v37_v12 = vld [vmem:[%s206_s2] sm:$0xff] }
   0x8   :  { %v58_v16 = vsub.f32 1.0, %v37_v12  ;;  %v61_v21 = vmul.f32 0.5, %v37_v12 }
   0x9   :  { %v39_v3 = vmul.f32 %v38_v2, %v38_v2 }
   0xa   :  { %v59_v20 = vmul.f32 0.5, %v58_v16 }
   0xb   :  { %v41_v4 = vsel %vm40_vm0, %v39_v3, 0.0 }
   0xc   :  { %42 = vadd.xlane.f32.xlu0 %v41_v4 }
  0x7f   :  { %v43_v5 = vpop.xlane.xlu0 %42 }
  0x80   :  { %125 = vrsqrt.f32 %v43_v5  ;;  %vm51_vm1 = vcmp.eq.f32.partialorder %v43_v5, inf  ;;  %v54_v14 = vand.u32 2147483648, %v43_v5  ;;  %vm53_vm2 = vcmp.eq.f32.partialorder %v43_v5, 0.0 }
  0x81   :  { %v60_v23 = vmul.f32 %v59_v20, %v43_v5  ;;  %127 = vrcp.f32 %v170_v27 }
  0x86   :  { %v126_v6 = vpop.eup %125 }
  0x87   :  { %v45_v7 = vmul.f32 %v126_v6, %v43_v5  ;;  %v128_v28 = vpop.eup %127 }
  0x88   :  { %v92_v29 = vmul.f32 8.0, %v128_v28  ;;  %vm96_vm4 = vweird.f32 %v128_v28 }
  0x89   :  { %v46_v8 = vmul.f32 %v126_v6, %v45_v7 }
  0x8a   :  { %v93_v30 = vsub.f32 1.0, %v92_v29 }
  0x8b   :  { %v47_v9 = vmul.f32 0.5, %v46_v8 }
  0x8c   :  { %v94_v34 = vmul.f32 %v128_v28, %v93_v30 }
  0x8d   :  { %v48_v10 = vsub.f32 1.5, %v47_v9 }
  0x8e   :  { %v95_v37 = vadd.f32 %v128_v28, %v94_v34 }
  0x8f   :  { %v49_v11 = vmul.f32 %v126_v6, %v48_v10 }
  0x90   :  { %v97_v40 = vsel %vm96_vm4, %v128_v28, %v95_v37 }
  0x91   :  { %v50_v13 = vmul.f32 %v49_v11, %v43_v5 }
  0x93   :  { %v52_v15 = vsel %vm51_vm1, %v43_v5, %v50_v13 }
  0x94   :  { %v55_v17 = vsel %vm53_vm2, %v54_v14, %v52_v15 }
  0x95   :  { %v56_v18 = vsub.f32 1.0, %v55_v17 }
  0x97   :  { %v57_v19 = vmax.f32 %v56_v18, 0.0 }
  0x99   :  { %v62_v22 = vmul.f32 %v57_v19, %v57_v19 }
  0x9b   :  { %v63_v24 = vmul.f32 %v62_v22, %v61_v21 }
  0x9d   :  { %v64_v25 = vadd.f32 %v63_v24, %v60_v23 }
  0x9f   :  { %v74_v26 = vsel %vm73_vm3, %v64_v25, 0.0 }
  0xa0   :  { %75 = vadd.xlane.f32.xlu0 %v74_v26 }
 0x113   :  { %v76_v31 = vpop.xlane.xlu0 %75 }
 0x114   :  { %v77_v32 = vrot.slane %v76_v31, 4 }
 0x116   :  { %v78_v33 = vadd.f32 %v77_v32, %v76_v31 }
 0x118   :  { %v79_v35 = vrot.slane %v78_v33, 2 }
 0x11a   :  { %v80_v36 = vadd.f32 %v79_v35, %v78_v33 }
 0x11c   :  { %v81_v38 = vrot.slane %v80_v36, 1 }
 0x11e   :  { %v82_v39 = vadd.f32 %v81_v38, %v80_v36 }
 0x120   :  { %117 = vpush %v82_v39 }
 0x121   :  { %119 = vpush %v97_v40 }
 0x151   :  { %s118_s0 = spop %117 }
 0x152   :  { %s120_s22 = spop %119 }
 0x153   :  { %s99_s23 = smul.f32 %s120_s22, %s118_s0 }
 0x155   :  { %100 = sst [smem:[#allocation5]] %s99_s23 }
 0x156   :  { %109 = dma.smem_to_hbm %s171_s24, 16, %s107_s21, [#allocation4]  }
 0x157   :  { %167 = dma.done.wait [#allocation4], 16  }
 0x158   :  { %168 = vsyncadd [#allocation4], 4294967280 }
 0x159   :  { %114 = sfence }
 0x15a   :  { %115 = vsyncpa [#allocation3], 1 }
 0x15b   :  { %116 = vsyncpa [#allocation4], 1 }

</bundles_post_ra>
